<compile_context>
chip_gen: v7x
topology: tpu7x:2x2x1
jax: 0.10.0
libtpu: 0.0.40
codegen_flags: <defaults>
</compile_context>

<pallas_src>
import jax
import jax.numpy as jnp
from jax.experimental import pallas as pl
from jax.experimental.pallas import tpu as pltpu

IN_FEATURES = 5
OUT_FEATURES = 1


def linear_kernel(x_ref, w_ref, b_ref, o_ref):
    # x_ref: [IN_FEATURES, TB] VMEM tile, batch on lanes.
    # w_ref: [IN_FEATURES] f32 in SMEM, b_ref: [1] f32 in SMEM.
    # o_ref: [1, TB] lane-dense output tile.
    acc = x_ref[pl.ds(0, 1), :] * w_ref[0]          # (1, TB) VPU multiply
    for k in range(1, IN_FEATURES):                 # unrolled VPU FMAs
        acc = acc + x_ref[pl.ds(k, 1), :] * w_ref[k]
    o_ref[...] = acc + b_ref[0]


def linear_regression_forward(x, w, b, *, max_tile=512):
    """x: [B, 5] f32, w: [1, 5] f32 (nn.Linear weight), b: [1] f32 -> [B, 1] f32."""
    batch = x.shape[0]

    # Batch tile: multiple of 128 lanes, capped at max_tile.
    tb = min(max_tile, ((batch + 127) // 128) * 128)
    b_pad = ((batch + tb - 1) // tb) * tb
    n_tiles = b_pad // tb

    # Lane-dense layout: features on sublanes, batch on lanes. Pad batch.
    xt = jnp.zeros((IN_FEATURES, b_pad), jnp.float32).at[:, :batch].set(
        x.astype(jnp.float32).T
    )
    w_vec = w.reshape(IN_FEATURES).astype(jnp.float32)
    b_vec = b.reshape(1).astype(jnp.float32)

    out = pl.pallas_call(
        linear_kernel,
        out_shape=jax.ShapeDtypeStruct((1, b_pad), jnp.float32),
        grid=(n_tiles,),
        in_specs=[
            # Batch-tiled input, features (5) span the full sublane dim.
            pl.BlockSpec((IN_FEATURES, tb), lambda i: (0, i)),
            # Tiny parameters stay resident in SMEM across all tiles.
            pl.BlockSpec(memory_space=pltpu.MemorySpace.SMEM),
            pl.BlockSpec(memory_space=pltpu.MemorySpace.SMEM),
        ],
        out_specs=pl.BlockSpec((1, tb), lambda i: (0, i)),
        compiler_params=pltpu.CompilerParams(
            dimension_semantics=("parallel",)  # shard batch tiles across TCs (v7x)
        ),
    )(xt, w_vec, b_vec)

    # Strip padding and present PyTorch's (B, 1) output shape.
    return out[0, :batch].reshape(batch, OUT_FEATURES)


if __name__ == "__main__":
    key = jax.random.PRNGKey(0)
    kx, kw, kb = jax.random.split(key, 3)

    batch = 8
    # Deterministic synthetic data/parameters (nn.Linear(5, 1) shapes).
    x = jax.random.normal(kx, (batch, IN_FEATURES), dtype=jnp.float32)
    w = jax.random.normal(kw, (OUT_FEATURES, IN_FEATURES), dtype=jnp.float32) * 0.1
    b = jax.random.normal(kb, (OUT_FEATURES,), dtype=jnp.float32) * 0.1

    y = linear_regression_forward(x, w, b)
    y = jax.block_until_ready(y)

    # Reference check in plain JAX (y = x @ W^T + b).
    y_ref = x @ w.T + b
    assert y.shape == (batch, OUT_FEATURES)
    assert jnp.allclose(y, y_ref, atol=1e-5), "mismatch vs reference"

    # TODO(synk): the original forward() never returns y_pred (returns None);
    # we return the computed prediction here since that is the intended compute.
    print("KERNEL_OK")
</pallas_src>

<mosaic_0001>
module attributes {stable_mosaic.version = 11 : i64} {
  func.func @linear_kernel(%arg0: i32, %arg1: memref<5x128xf32, #tpu.memory_space<vmem>>, %arg2: memref<5xf32, #tpu.memory_space<smem>>, %arg3: memref<1xf32, #tpu.memory_space<smem>>, %arg4: memref<1x128xf32, #tpu.memory_space<vmem>>) attributes {dimension_semantics = [#tpu.dimension_semantics<parallel>], iteration_bounds = array<i64: 1>, scalar_prefetch = 0 : i64, scratch_operands = 0 : i64, tpu.core_type = #tpu.core_type<tc>, window_params = [{transform_indices = @transform_0, window_bounds = array<i64: 5, 128>}, {transform_indices = @transform_1, window_bounds = array<i64: 5>}, {transform_indices = @transform_2, window_bounds = array<i64: 1>}, {transform_indices = @transform_3, window_bounds = array<i64: 1, 128>}]} {
    %c0 = arith.constant 0 : index
    %c0_0 = arith.constant 0 : index
    %0 = vector.load %arg1[%c0, %c0_0] : memref<5x128xf32, #tpu.memory_space<vmem>>, vector<1x128xf32>
    %c0_1 = arith.constant 0 : index
    %1 = memref.load %arg2[%c0_1] : memref<5xf32, #tpu.memory_space<smem>>
    %2 = vector.broadcast %1 : f32 to vector<1x128xf32>
    %3 = arith.mulf %0, %2 : vector<1x128xf32>
    %c1 = arith.constant 1 : index
    %c0_2 = arith.constant 0 : index
    %4 = vector.load %arg1[%c1, %c0_2] : memref<5x128xf32, #tpu.memory_space<vmem>>, vector<1x128xf32>
    %c1_3 = arith.constant 1 : index
    %5 = memref.load %arg2[%c1_3] : memref<5xf32, #tpu.memory_space<smem>>
    %6 = vector.broadcast %5 : f32 to vector<1x128xf32>
    %7 = arith.mulf %4, %6 : vector<1x128xf32>
    %8 = arith.addf %3, %7 : vector<1x128xf32>
    %c2 = arith.constant 2 : index
    %c0_4 = arith.constant 0 : index
    %9 = vector.load %arg1[%c2, %c0_4] : memref<5x128xf32, #tpu.memory_space<vmem>>, vector<1x128xf32>
    %c2_5 = arith.constant 2 : index
    %10 = memref.load %arg2[%c2_5] : memref<5xf32, #tpu.memory_space<smem>>
    %11 = vector.broadcast %10 : f32 to vector<1x128xf32>
    %12 = arith.mulf %9, %11 : vector<1x128xf32>
    %13 = arith.addf %8, %12 : vector<1x128xf32>
    %c3 = arith.constant 3 : index
    %c0_6 = arith.constant 0 : index
    %14 = vector.load %arg1[%c3, %c0_6] : memref<5x128xf32, #tpu.memory_space<vmem>>, vector<1x128xf32>
    %c3_7 = arith.constant 3 : index
    %15 = memref.load %arg2[%c3_7] : memref<5xf32, #tpu.memory_space<smem>>
    %16 = vector.broadcast %15 : f32 to vector<1x128xf32>
    %17 = arith.mulf %14, %16 : vector<1x128xf32>
    %18 = arith.addf %13, %17 : vector<1x128xf32>
    %c4 = arith.constant 4 : index
    %c0_8 = arith.constant 0 : index
    %19 = vector.load %arg1[%c4, %c0_8] : memref<5x128xf32, #tpu.memory_space<vmem>>, vector<1x128xf32>
    %c4_9 = arith.constant 4 : index
    %20 = memref.load %arg2[%c4_9] : memref<5xf32, #tpu.memory_space<smem>>
    %21 = vector.broadcast %20 : f32 to vector<1x128xf32>
    %22 = arith.mulf %19, %21 : vector<1x128xf32>
    %23 = arith.addf %18, %22 : vector<1x128xf32>
    %c0_10 = arith.constant 0 : index
    %24 = memref.load %arg3[%c0_10] : memref<1xf32, #tpu.memory_space<smem>>
    %25 = vector.broadcast %24 : f32 to vector<1x128xf32>
    %26 = arith.addf %23, %25 : vector<1x128xf32>
    %c0_11 = arith.constant 0 : index
    %c0_12 = arith.constant 0 : index
    %27 = vector.load %arg4[%c0_11, %c0_12] : memref<1x128xf32, #tpu.memory_space<vmem>>, vector<1x128xf32>
    tpu.vector_store %arg4[%c0_11, %c0_12], %26 {strides = array<i32>} : memref<1x128xf32, #tpu.memory_space<vmem>>, vector<1x128xf32>,
    return
  }
  func.func @transform_0(%arg0: i32) -> (i32, i32) {
    %c0_i32 = arith.constant 0 : i32
    %c0_i32_0 = arith.constant 0 : i32
    return %c0_i32, %arg0 : i32, i32
  }
  func.func @transform_1(%arg0: i32) -> i32 {
    %c0_i32 = arith.constant 0 : i32
    %c0_i32_0 = arith.constant 0 : i32
    return %c0_i32 : i32
  }
  func.func @transform_2(%arg0: i32) -> i32 {
    %c0_i32 = arith.constant 0 : i32
    %c0_i32_0 = arith.constant 0 : i32
    return %c0_i32 : i32
  }
  func.func @transform_3(%arg0: i32) -> (i32, i32) {
    %c0_i32 = arith.constant 0 : i32
    %c0_i32_0 = arith.constant 0 : i32
    return %c0_i32, %arg0 : i32, i32
  }
}

</mosaic_0001>

<bundles_post_ra>
// kernel: tpu_custom_call.1
= control target key start
LH: loop header
LB: loop body
LE: loop exit
PB: predicated region body
PF: predicated region fallthrough
CT: control target
= control target key end

     0   :  { %9 = vsyncpa [#allocation4], 0  ;;  %s207_s0 = inlined_call_operand.hbm [shape: f32[5,128], index: 0, kind: input, shape index: {}]   ;;  %s208_s1 = inlined_call_operand.vmem [shape: f32[5], index: 1, kind: input, shape index: {}]   ;;  %s209_s2 = inlined_call_operand.<no memory space> [shape: f32[1], index: 2, kind: input, shape index: {}]   ;;  %s210_s3 = inlined_call_operand.hbm [shape: f32[1,128], index: 3, kind: output, shape index: {}]  }
   0x1   :  { %10 = vsyncpa [#allocation6], 0 }
   0x2   :  { %11 = vsyncpa [#allocation5], 0  ;;  %s28_s14 = sshll.u32 %s208_s1, 4  ;;  %s154_s15 = smov [#allocation3]   ;;  %s29_s14 = int_to_ptr.vmem [resolvable:$true] %s28_s14 }
   0x3   :  { %s18_s16 = sshll.u32 %s154_s15, 4  ;;  %s92_s19 = scalar_lea.hbm %s207_s0, 128  ;;  %s19_s16 = int_to_ptr.vmem [resolvable:$true] %s18_s16 }
   0x4   :  { %p93_p0 = scmp.ne.s32.totalorder %s207_s0, %s92_s19  ;;  %p96_p1 = scmp.lt.u32.totalorder %s92_s19, %s207_s0 }
   0x6   :  { %p98_p2 = pnand %p96_p1, %p93_p0 }
   0x8   :  { %101 = shalt.err (!%p98_p2)
}
   0x9   :  { %s102_s24 = scalar_lea.vmem %s19_s16, 128  ;;  %p107_p4 = scmp.lt.s32.totalorder %s19_s16, %s19_s16 }
   0xa   :  { %p103_p3 = scmp.ne.s32.totalorder %s19_s16, %s102_s24  ;;  %p108_p5 = scmp.lt.s32.totalorder %s102_s24, %s102_s24 }
   0xc   :  { %p109_p6 = por %p108_p5, %p107_p4 }
   0xe   :  { %p110_p7 = pnand %p109_p6, %p103_p3 }
  0x10   :  { %113 = shalt.err (!%p110_p7)
}
  0x11   :  { %21 = dma.hbm_to_vmem [thread:$0]  %s207_s0, 128, %s19_s16, [#allocation4]  }
  0x12   :  { %s114_s26 = scalar_lea.vmem %s29_s14, 16  ;;  %p119_p9 = scmp.lt.s32.totalorder %s29_s14, %s29_s14 }
  0x13   :  { %p115_p8 = scmp.ne.s32.totalorder %s29_s14, %s114_s26  ;;  %p120_p10 = scmp.lt.s32.totalorder %s114_s26, %s114_s26 }
  0x15   :  { %p121_p11 = por %p120_p10, %p119_p9 }
  0x17   :  { %p122_p12 = pnand %p121_p11, %p115_p8 }
  0x19   :  { %125 = shalt.err (!%p122_p12)
}
  0x1a   :  { %s155_s27 = smov [#allocation7]  }
  0x1b   :  { %31 = dma.vmem_to_smem %s29_s14, 16, %s155_s27, [#allocation6]  }
  0x1c   :  { %148 = dma.done.wait [#allocation4], 128  }
  0x1d   :  { %149 = vsyncadd [#allocation4], 4294967168 }
  0x1e   :  { %150 = dma.done.wait [#allocation6], 16  }
  0x1f   :  { %151 = vsyncadd [#allocation6], 4294967280 }
  0x20   :  { %40 = sfence }
  0x21   :  { %s42_s28 = sld [smem:[#allocation7]]  ;;  %s85_s29 = sld [smem:[#allocation7 + $0x1]]  ;;  %v41_v0 = vld [vmem:[#allocation3] sm:$0x1]  ;;  %v45_v1 = vld [vmem:[#allocation3 + $0x1] sm:$0x1]  ;;  %v66_v18 = vstv %s209_s2 }
  0x22   :  { %s86_s30 = sld [smem:[#allocation7 + $0x2]]  ;;  %s87_s4 = sld [smem:[#allocation7 + $0x3]]  ;;  %v50_v2 = vld [vmem:[#allocation3 + $0x2] sm:$0x1]  ;;  %v55_v7 = vld [vmem:[#allocation3 + $0x3] sm:$0x1] }
  0x23   :  { %s88_s5 = sld [smem:[#allocation7 + $0x4]]  ;;  %v60_v11 = vld [vmem:[#allocation3 + $0x4] sm:$0x1]  ;;  %s156_s7 = smov [#allocation8]  }
  0x24   :  { %s75_s8 = sshll.u32 %s156_s7, 4  ;;  %s76_s8 = int_to_ptr.vmem [resolvable:$true] %s75_s8 }
  0x25   :  { %s126_s9 = scalar_lea.vmem %s76_s8, 16  ;;  %s130_s10 = scalar_lea.vmem %s76_s8, 32 }
  0x26   :  { %p127_p13 = scmp.ne.s32.totalorder %s76_s8, %s126_s9  ;;  %p131_p0 = scmp.lt.s32.totalorder %s76_s8, %s76_s8 }
  0x27   :  { %v43_v3 = vstv %s42_s28  ;;  %v47_v5 = vstv %s85_s29  ;;  %p132_p1 = scmp.lt.s32.totalorder %s130_s10, %s126_s9 }
  0x28   :  { %v44_v4 = vmul.f32 %v43_v3, %v41_v0  ;;  %v52_v6 = vstv %s86_s30  ;;  %v48_v8 = vmul.f32 %v47_v5, %v45_v1  ;;  %v57_v10 = vstv %s87_s4 }
  0x29   :  { %v53_v9 = vmul.f32 %v52_v6, %v50_v2  ;;  %v62_v12 = vstv %s88_s5  ;;  %v58_v14 = vmul.f32 %v57_v10, %v55_v7  ;;  %p133_p2 = por %p132_p1, %p131_p0 }
  0x2a   :  { %v49_v13 = vadd.f32 %v48_v8, %v44_v4  ;;  %v63_v16 = vmul.f32 %v62_v12, %v60_v11 }
  0x2b   :  { %p134_p3 = pnand %p133_p2, %p127_p13 }
  0x2c   :  { %v54_v15 = vadd.f32 %v53_v9, %v49_v13 }
  0x2e   :  { %v59_v17 = vadd.f32 %v58_v14, %v54_v15 }
  0x30   :  { %v64_v19 = vadd.f32 %v63_v16, %v59_v17 }
  0x32   :  { %v67_v20 = vadd.f32 %v66_v18, %v64_v19 }
  0x34   :  { %68 = vst [vmem:[#allocation8] sm:$0x1] %v67_v20 }
  0x35   :  { %137 = shalt.err (!%p134_p3)
}
  0x36   :  { %s138_s13 = scalar_lea.hbm %s210_s3, 16 }
  0x37   :  { %p139_p4 = scmp.ne.s32.totalorder %s210_s3, %s138_s13  ;;  %p142_p5 = scmp.lt.u32.totalorder %s138_s13, %s210_s3 }
  0x39   :  { %p144_p6 = pnand %p142_p5, %p139_p4 }
  0x3b   :  { %147 = shalt.err (!%p144_p6)
}
  0x3c   :  { %78 = dma.vmem_to_hbm [thread:$0]  %s76_s8, 16, %s210_s3, [#allocation5]  }
  0x3d   :  { %152 = dma.done.wait [#allocation5], 16  }
  0x3e   :  { %153 = vsyncadd [#allocation5], 4294967280 }
  0x3f   :  { %82 = vsyncpa [#allocation4], 1 }
  0x40   :  { %83 = vsyncpa [#allocation5], 1 }
  0x41   :  { %84 = vsyncpa [#allocation6], 1 }

</bundles_post_ra>
